<compile_context>
chip_gen: v7x
topology: tpu7x:2x2x1
jax: 0.10.0
libtpu: 0.0.40
codegen_flags: <defaults>
</compile_context>

<pallas_src>
import jax
import jax.numpy as jnp
from jax import lax
from jax.experimental import pallas as pl
from jax.experimental.pallas import tpu as pltpu

HIDDEN = 32          # hidden_size
OUT_LIN = 32         # out_features_lin
OUT_END = 1          # out_features_end
INPUT_SIZE = 1
BN_EPS = 1e-5
LEAKY_SLOPE = 0.01
GATES = 4 * HIDDEN   # 128 lanes

# ---- packed parameter array layout: [_PACK_ROWS, GATES] f32 -----------------
_ROW_WHH = 0                 # rows [0, H):      w_hh^T            [H, 4H]
_ROW_W0 = HIDDEN             # rows [H, 2H):     w0^T zero-padded  [H, 4H]
_ROW_SMALL = 2 * HIDDEN      # rows [2H, 2H+11): small params (one row each)
_R_W_IH = 0      # w_ih^T as a row                 [1, 4H]
_R_BGATES = 1    # b_ih + b_hh                     [1, 4H]
_R_BN0_G = 2     # fc0_bn gamma                    [1, H]
_R_BN0_B = 3     # fc0_bn beta                     [1, H]
_R_B0 = 4        # fc_0 bias (zero-padded)         [1, 4H]
_R_BN1_G = 5     # fc1_bn gamma (zero-padded)      [1, 4H]
_R_BN1_B = 6     # fc1_bn beta (zero-padded)       [1, 4H]
_R_W1 = 7        # fc_1 weight row (zero-padded)   [1, 4H]
_R_B1 = 8        # fc_1 bias                       [1, 1]
_R_ACT_SCALE = 9     # 0.5 on i/f/o quarters, 1.0 on g quarter (pre & post)
_R_ACT_OFF = 10      # 0.5 on i/f/o quarters, 0.0 on g quarter (post offset)
_N_SMALL = 11
_PACK_ROWS = 80      # 2H + 11 = 75, padded up to a multiple of 8 sublanes


def _leaky_relu(v):
    return jnp.where(v >= 0, v, LEAKY_SLOPE * v)


def _batchnorm_train(v, gamma, beta):
    # training-mode BatchNorm1d: batch mean, biased batch variance
    mean = jnp.mean(v, axis=0, keepdims=True)
    var = jnp.mean((v - mean) ** 2, axis=0, keepdims=True)
    return (v - mean) * lax.rsqrt(var + BN_EPS) * gamma + beta


def lstm_base_kernel(x_ref,    # [B, T]            batch-major input, one dense tile
                     w_ref,    # [_PACK_ROWS, 4H]  all static parameters, one DMA
                     out_ref): # [B, OUT_END]
    B, T = x_ref.shape
    H = HIDDEN
    S = _ROW_SMALL

    W = w_ref[...]                                     # [80, 128]
    w_hh_t = W[_ROW_WHH:_ROW_WHH + H, :]               # [H, 4H]
    w0_t = W[_ROW_W0:_ROW_W0 + H, :]                   # [H, 4H], cols >= OUT_LIN are 0

    w_ih_row = W[S + _R_W_IH:S + _R_W_IH + 1, :]       # [1, 4H]
    b_gates = W[S + _R_BGATES:S + _R_BGATES + 1, :]    # [1, 4H]
    bn0_g = W[S + _R_BN0_G:S + _R_BN0_G + 1, :H]       # [1, H]
    bn0_b = W[S + _R_BN0_B:S + _R_BN0_B + 1, :H]
    b0 = W[S + _R_B0:S + _R_B0 + 1, :]                 # [1, 4H], padded zeros
    bn1_g = W[S + _R_BN1_G:S + _R_BN1_G + 1, :]
    bn1_b = W[S + _R_BN1_B:S + _R_BN1_B + 1, :]
    w1_row = W[S + _R_W1:S + _R_W1 + 1, :]             # [1, 4H], padded zeros
    b1 = W[S + _R_B1:S + _R_B1 + 1, 0:1]               # [1, 1]
    act_scale = W[S + _R_ACT_SCALE:S + _R_ACT_SCALE + 1, :]   # [1, 4H]
    act_off = W[S + _R_ACT_OFF:S + _R_ACT_OFF + 1, :]         # [1, 4H]

    x_bt = x_ref[...]                                  # [B, T]

    h = jnp.zeros((B, H), jnp.float32)
    c = jnp.zeros((B, H), jnp.float32)

    # Static unroll of the recurrence (T is small and fixed) so the scheduler
    # can overlap MXU drain / EUP / VPU work across adjacent steps.
    # TODO(synk): hold W_hh in the MXU weight registers across the T steps via
    # pltpu.matmul_push_rhs / matmul_acc_lhs / matmul_pop (the RHS of this dot
    # is identical every step); adopt only after a bundle dump confirms Mosaic
    # does not already hoist the weight push.
    for t in range(T):
        x_t = x_bt[:, t:t + 1]                         # [B, 1] static lane slice
        gates = (x_t * w_ih_row + b_gates
                 + jnp.dot(h, w_hh_t, preferred_element_type=jnp.float32))  # [B, 4H]
        # Single fused EUP pass: sigmoid(x) = 0.5*tanh(x/2) + 0.5 on i/f/o
        # lane quarters, plain tanh on the g quarter.
        act = jnp.tanh(gates * act_scale) * act_scale + act_off             # [B, 4H]
        i = act[:, 0:H]
        f = act[:, H:2 * H]
        g = act[:, 2 * H:3 * H]
        o = act[:, 3 * H:4 * H]
        c = f * c + i * g
        h = o * jnp.tanh(c)

    # fc_0(LeakyReLU(BN(hn))) -- output kept in padded 128-lane layout; the
    # zero-padded weight columns / bias / BN params keep extra lanes at exact 0.
    y = _leaky_relu(_batchnorm_train(h, bn0_g, bn0_b))                       # [B, H]
    y = jnp.dot(y, w0_t, preferred_element_type=jnp.float32) + b0            # [B, 4H]
    # fc_1(LeakyReLU(BN(out))) -- N=1 matmul replaced by VPU mul + lane reduce.
    y = _leaky_relu(_batchnorm_train(y, bn1_g, bn1_b))
    out = jnp.sum(y * w1_row, axis=-1, keepdims=True) + b1                   # [B, 1]

    out_ref[...] = out.astype(out_ref.dtype)


def init_params(key):
    """Deterministic init matching the PyTorch module's __init__."""
    H, I, OL, OE = HIDDEN, INPUT_SIZE, OUT_LIN, OUT_END
    ks = jax.random.split(key, 6)
    k_lstm = 1.0 / jnp.sqrt(H)
    # nn.LSTM default init: U(-1/sqrt(H), 1/sqrt(H))
    w_ih = jax.random.uniform(ks[0], (4 * H, I), minval=-k_lstm, maxval=k_lstm)
    w_hh = jax.random.uniform(ks[1], (4 * H, H), minval=-k_lstm, maxval=k_lstm)
    b_ih = jax.random.uniform(ks[2], (4 * H,), minval=-k_lstm, maxval=k_lstm)
    b_hh = jax.random.uniform(ks[3], (4 * H,), minval=-k_lstm, maxval=k_lstm)
    # Linear layers: xavier_uniform weight, zero bias
    lim0 = jnp.sqrt(6.0 / (H + OL))
    w0 = jax.random.uniform(ks[4], (OL, H), minval=-lim0, maxval=lim0)
    b0 = jnp.zeros((OL,))
    lim1 = jnp.sqrt(6.0 / (OL + OE))
    w1 = jax.random.uniform(ks[5], (OE, OL), minval=-lim1, maxval=lim1)
    b1 = jnp.zeros((OE,))
    return dict(
        w_ih=w_ih.astype(jnp.float32), w_hh=w_hh.astype(jnp.float32),
        b_ih=b_ih.astype(jnp.float32), b_hh=b_hh.astype(jnp.float32),
        bn0_g=jnp.ones((HIDDEN,), jnp.float32), bn0_b=jnp.zeros((HIDDEN,), jnp.float32),
        w0=w0.astype(jnp.float32), b0=b0.astype(jnp.float32),
        bn1_g=jnp.ones((OUT_LIN,), jnp.float32), bn1_b=jnp.zeros((OUT_LIN,), jnp.float32),
        w1=w1.astype(jnp.float32), b1=b1.astype(jnp.float32),
    )


def _pad_row(v, width=GATES):
    v = jnp.asarray(v, jnp.float32).reshape(1, -1)
    return jnp.pad(v, ((0, 0), (0, width - v.shape[1])))


def pack_params(p):
    """Pack ALL static parameters into one [80, 128] array. Call ONCE at init."""
    H = HIDDEN
    w_hh_t = jnp.asarray(p['w_hh'], jnp.float32).T                       # [H, 4H]
    w0_t = jnp.pad(jnp.asarray(p['w0'], jnp.float32).T,
                   ((0, 0), (0, GATES - OUT_LIN)))                        # [H, 4H]

    lane = jnp.arange(GATES)
    is_g = (lane >= 2 * H) & (lane < 3 * H)
    act_scale = jnp.where(is_g, 1.0, 0.5).astype(jnp.float32).reshape(1, -1)
    act_off = jnp.where(is_g, 0.0, 0.5).astype(jnp.float32).reshape(1, -1)

    small = [None] * _N_SMALL
    small[_R_W_IH] = _pad_row(p['w_ih'].reshape(-1))        # [4H,1] -> [1,4H]
    small[_R_BGATES] = _pad_row(p['b_ih'] + p['b_hh'])
    small[_R_BN0_G] = _pad_row(p['bn0_g'])
    small[_R_BN0_B] = _pad_row(p['bn0_b'])
    small[_R_B0] = _pad_row(p['b0'])
    small[_R_BN1_G] = _pad_row(p['bn1_g'])
    small[_R_BN1_B] = _pad_row(p['bn1_b'])
    small[_R_W1] = _pad_row(p['w1'].reshape(-1))            # [1,OL] -> row
    small[_R_B1] = _pad_row(p['b1'])
    small[_R_ACT_SCALE] = act_scale
    small[_R_ACT_OFF] = act_off

    packed = jnp.concatenate([w_hh_t, w0_t] + small, axis=0)              # [75, 128]
    return jnp.pad(packed, ((0, _PACK_ROWS - packed.shape[0]), (0, 0)))   # [80, 128]


@jax.jit
def lstm_base_forward(x, packed_params):
    """x: [B, T, input_size] (batch_first, like the PyTorch module)."""
    B, T, I = x.shape
    assert I == INPUT_SIZE == 1, "kernel specializes the I=1 input projection"
    x_bt = x[:, :, 0].astype(jnp.float32)                  # [B, T] single dense tile
    vmem = pl.BlockSpec(memory_space=pltpu.MemorySpace.VMEM)
    return pl.pallas_call(
        lstm_base_kernel,
        out_shape=jax.ShapeDtypeStruct((B, OUT_END), jnp.float32),
        in_specs=[vmem, vmem],
        out_specs=vmem,
    )(x_bt, packed_params)
    # TODO(synk): if B or T scale up, add a "parallel" batch grid and
    # time-tile the x BlockSpec (pl.Buffered(2)) instead of whole-array VMEM
    # residency; note train-mode BatchNorm needs full-batch statistics, so a
    # v7x 2-TC batch split requires a cross-core reduction for BN.


def reference_forward(x, p):
    """Pure-JAX reference mirroring the PyTorch forward (train-mode BN)."""
    B, T, I = x.shape
    H = HIDDEN
    h = jnp.zeros((B, H), jnp.float32)
    c = jnp.zeros((B, H), jnp.float32)
    for t in range(T):
        gates = (x[:, t, :] @ p['w_ih'].T + p['b_ih']
                 + h @ p['w_hh'].T + p['b_hh'])
        i = jax.nn.sigmoid(gates[:, 0:H])
        f = jax.nn.sigmoid(gates[:, H:2 * H])
        g = jnp.tanh(gates[:, 2 * H:3 * H])
        o = jax.nn.sigmoid(gates[:, 3 * H:4 * H])
        c = f * c + i * g
        h = o * jnp.tanh(c)

    def bn(v, g_, b_):
        m = v.mean(0)
        var = ((v - m) ** 2).mean(0)
        return (v - m) / jnp.sqrt(var + BN_EPS) * g_ + b_

    def lrelu(v):
        return jnp.where(v >= 0, v, LEAKY_SLOPE * v)

    y = lrelu(bn(h, p['bn0_g'], p['bn0_b'])) @ p['w0'].T + p['b0']
    y = lrelu(bn(y, p['bn1_g'], p['bn1_b'])) @ p['w1'].T + p['b1']
    return y


if __name__ == "__main__":
    key = jax.random.PRNGKey(0)
    k_x, k_p = jax.random.split(key)

    B, T = 8, 8                              # small batch / sequence length
    x = jax.random.normal(k_x, (B, T, INPUT_SIZE), dtype=jnp.float32)
    params = init_params(k_p)
    packed = pack_params(params)             # built once, reused every call

    out = jax.block_until_ready(lstm_base_forward(x, packed))
    ref = jax.block_until_ready(reference_forward(x, params))

    assert out.shape == (B, OUT_END)
    assert jnp.allclose(out, ref, atol=1e-5, rtol=1e-5), (out, ref)
    print("KERNEL_OK")
</pallas_src>

<mosaic_0001>
module attributes {stable_mosaic.version = 11 : i64} {
  func.func @lstm_base_kernel(%arg0: memref<8x8xf32, #tpu.memory_space<vmem>>, %arg1: memref<80x128xf32, #tpu.memory_space<vmem>>, %arg2: memref<8x1xf32, #tpu.memory_space<vmem>>) attributes {dimension_semantics = [], scalar_prefetch = 0 : i64, scratch_operands = 0 : i64, tpu.core_type = #tpu.core_type<tc>} {
    %c0 = arith.constant 0 : index
    %c0_0 = arith.constant 0 : index
    %0 = vector.load %arg1[%c0, %c0_0] : memref<80x128xf32, #tpu.memory_space<vmem>>, vector<80x128xf32>
    %1 = vector.extract_strided_slice %0 {offsets = [0, 0], sizes = [32, 128], strides = [1, 1]} : vector<80x128xf32> to vector<32x128xf32>
    %2 = vector.extract_strided_slice %0 {offsets = [32, 0], sizes = [32, 128], strides = [1, 1]} : vector<80x128xf32> to vector<32x128xf32>
    %3 = vector.extract_strided_slice %0 {offsets = [64, 0], sizes = [1, 128], strides = [1, 1]} : vector<80x128xf32> to vector<1x128xf32>
    %4 = vector.extract_strided_slice %0 {offsets = [65, 0], sizes = [1, 128], strides = [1, 1]} : vector<80x128xf32> to vector<1x128xf32>
    %5 = vector.extract_strided_slice %0 {offsets = [66, 0], sizes = [1, 32], strides = [1, 1]} : vector<80x128xf32> to vector<1x32xf32>
    %6 = vector.extract_strided_slice %0 {offsets = [67, 0], sizes = [1, 32], strides = [1, 1]} : vector<80x128xf32> to vector<1x32xf32>
    %7 = vector.extract_strided_slice %0 {offsets = [68, 0], sizes = [1, 128], strides = [1, 1]} : vector<80x128xf32> to vector<1x128xf32>
    %8 = vector.extract_strided_slice %0 {offsets = [69, 0], sizes = [1, 128], strides = [1, 1]} : vector<80x128xf32> to vector<1x128xf32>
    %9 = vector.extract_strided_slice %0 {offsets = [70, 0], sizes = [1, 128], strides = [1, 1]} : vector<80x128xf32> to vector<1x128xf32>
    %10 = vector.extract_strided_slice %0 {offsets = [71, 0], sizes = [1, 128], strides = [1, 1]} : vector<80x128xf32> to vector<1x128xf32>
    %11 = vector.extract_strided_slice %0 {offsets = [72, 0], sizes = [1, 1], strides = [1, 1]} : vector<80x128xf32> to vector<1x1xf32>
    %12 = vector.extract_strided_slice %0 {offsets = [73, 0], sizes = [1, 128], strides = [1, 1]} : vector<80x128xf32> to vector<1x128xf32>
    %13 = vector.extract_strided_slice %0 {offsets = [74, 0], sizes = [1, 128], strides = [1, 1]} : vector<80x128xf32> to vector<1x128xf32>
    %c0_1 = arith.constant 0 : index
    %c0_2 = arith.constant 0 : index
    %14 = vector.load %arg0[%c0_1, %c0_2] : memref<8x8xf32, #tpu.memory_space<vmem>>, vector<8x8xf32>
    %cst = arith.constant 0.000000e+00 : f32
    %15 = vector.broadcast %cst : f32 to vector<8x32xf32>
    %cst_3 = arith.constant 0.000000e+00 : f32
    %16 = vector.broadcast %cst_3 : f32 to vector<8x32xf32>
    %17 = vector.extract_strided_slice %14 {offsets = [0, 0], sizes = [8, 1], strides = [1, 1]} : vector<8x8xf32> to vector<8x1xf32>
    %18 = vector.broadcast %17 : vector<8x1xf32> to vector<8x128xf32>
    %19 = vector.broadcast %3 : vector<1x128xf32> to vector<8x128xf32>
    %20 = arith.mulf %18, %19 : vector<8x128xf32>
    %21 = vector.broadcast %4 : vector<1x128xf32> to vector<8x128xf32>
    %22 = arith.addf %20, %21 : vector<8x128xf32>
    %cst_4 = arith.constant dense<0.000000e+00> : vector<8x128xf32>
    %23 = tpu.matmul %15, %1, %cst_4 {dimension_numbers = #tpu.dot_dimension_numbers<[1], [0], [0], [1], [0, 0, 1, 1], [], []>} : vector<8x32xf32>, vector<32x128xf32>, vector<8x128xf32> -> vector<8x128xf32>
    %24 = arith.addf %22, %23 : vector<8x128xf32>
    %25 = vector.broadcast %12 : vector<1x128xf32> to vector<8x128xf32>
    %26 = arith.mulf %24, %25 : vector<8x128xf32>
    %27 = math.tanh %26 : vector<8x128xf32>
    %28 = vector.broadcast %12 : vector<1x128xf32> to vector<8x128xf32>
    %29 = arith.mulf %27, %28 : vector<8x128xf32>
    %30 = vector.broadcast %13 : vector<1x128xf32> to vector<8x128xf32>
    %31 = arith.addf %29, %30 : vector<8x128xf32>
    %32 = vector.extract_strided_slice %31 {offsets = [0, 0], sizes = [8, 32], strides = [1, 1]} : vector<8x128xf32> to vector<8x32xf32>
    %33 = vector.extract_strided_slice %31 {offsets = [0, 32], sizes = [8, 32], strides = [1, 1]} : vector<8x128xf32> to vector<8x32xf32>
    %34 = vector.extract_strided_slice %31 {offsets = [0, 64], sizes = [8, 32], strides = [1, 1]} : vector<8x128xf32> to vector<8x32xf32>
    %35 = vector.extract_strided_slice %31 {offsets = [0, 96], sizes = [8, 32], strides = [1, 1]} : vector<8x128xf32> to vector<8x32xf32>
    %36 = arith.mulf %33, %16 : vector<8x32xf32>
    %37 = arith.mulf %32, %34 : vector<8x32xf32>
    %38 = arith.addf %36, %37 : vector<8x32xf32>
    %39 = math.tanh %38 : vector<8x32xf32>
    %40 = arith.mulf %35, %39 : vector<8x32xf32>
    %41 = vector.extract_strided_slice %14 {offsets = [0, 1], sizes = [8, 1], strides = [1, 1]} : vector<8x8xf32> to vector<8x1xf32>
    %42 = vector.broadcast %41 : vector<8x1xf32> to vector<8x128xf32>
    %43 = vector.broadcast %3 : vector<1x128xf32> to vector<8x128xf32>
    %44 = arith.mulf %42, %43 : vector<8x128xf32>
    %45 = vector.broadcast %4 : vector<1x128xf32> to vector<8x128xf32>
    %46 = arith.addf %44, %45 : vector<8x128xf32>
    %cst_5 = arith.constant dense<0.000000e+00> : vector<8x128xf32>
    %47 = tpu.matmul %40, %1, %cst_5 {dimension_numbers = #tpu.dot_dimension_numbers<[1], [0], [0], [1], [0, 0, 1, 1], [], []>} : vector<8x32xf32>, vector<32x128xf32>, vector<8x128xf32> -> vector<8x128xf32>
    %48 = arith.addf %46, %47 : vector<8x128xf32>
    %49 = vector.broadcast %12 : vector<1x128xf32> to vector<8x128xf32>
    %50 = arith.mulf %48, %49 : vector<8x128xf32>
    %51 = math.tanh %50 : vector<8x128xf32>
    %52 = vector.broadcast %12 : vector<1x128xf32> to vector<8x128xf32>
    %53 = arith.mulf %51, %52 : vector<8x128xf32>
    %54 = vector.broadcast %13 : vector<1x128xf32> to vector<8x128xf32>
    %55 = arith.addf %53, %54 : vector<8x128xf32>
    %56 = vector.extract_strided_slice %55 {offsets = [0, 0], sizes = [8, 32], strides = [1, 1]} : vector<8x128xf32> to vector<8x32xf32>
    %57 = vector.extract_strided_slice %55 {offsets = [0, 32], sizes = [8, 32], strides = [1, 1]} : vector<8x128xf32> to vector<8x32xf32>
    %58 = vector.extract_strided_slice %55 {offsets = [0, 64], sizes = [8, 32], strides = [1, 1]} : vector<8x128xf32> to vector<8x32xf32>
    %59 = vector.extract_strided_slice %55 {offsets = [0, 96], sizes = [8, 32], strides = [1, 1]} : vector<8x128xf32> to vector<8x32xf32>
    %60 = arith.mulf %57, %38 : vector<8x32xf32>
    %61 = arith.mulf %56, %58 : vector<8x32xf32>
    %62 = arith.addf %60, %61 : vector<8x32xf32>
    %63 = math.tanh %62 : vector<8x32xf32>
    %64 = arith.mulf %59, %63 : vector<8x32xf32>
    %65 = vector.extract_strided_slice %14 {offsets = [0, 2], sizes = [8, 1], strides = [1, 1]} : vector<8x8xf32> to vector<8x1xf32>
    %66 = vector.broadcast %65 : vector<8x1xf32> to vector<8x128xf32>
    %67 = vector.broadcast %3 : vector<1x128xf32> to vector<8x128xf32>
    %68 = arith.mulf %66, %67 : vector<8x128xf32>
    %69 = vector.broadcast %4 : vector<1x128xf32> to vector<8x128xf32>
    %70 = arith.addf %68, %69 : vector<8x128xf32>
    %cst_6 = arith.constant dense<0.000000e+00> : vector<8x128xf32>
    %71 = tpu.matmul %64, %1, %cst_6 {dimension_numbers = #tpu.dot_dimension_numbers<[1], [0], [0], [1], [0, 0, 1, 1], [], []>} : vector<8x32xf32>, vector<32x128xf32>, vector<8x128xf32> -> vector<8x128xf32>
    %72 = arith.addf %70, %71 : vector<8x128xf32>
    %73 = vector.broadcast %12 : vector<1x128xf32> to vector<8x128xf32>
    %74 = arith.mulf %72, %73 : vector<8x128xf32>
    %75 = math.tanh %74 : vector<8x128xf32>
    %76 = vector.broadcast %12 : vector<1x128xf32> to vector<8x128xf32>
    %77 = arith.mulf %75, %76 : vector<8x128xf32>
    %78 = vector.broadcast %13 : vector<1x128xf32> to vector<8x128xf32>
    %79 = arith.addf %77, %78 : vector<8x128xf32>
    %80 = vector.extract_strided_slice %79 {offsets = [0, 0], sizes = [8, 32], strides = [1, 1]} : vector<8x128xf32> to vector<8x32xf32>
    %81 = vector.extract_strided_slice %79 {offsets = [0, 32], sizes = [8, 32], strides = [1, 1]} : vector<8x128xf32> to vector<8x32xf32>
    %82 = vector.extract_strided_slice %79 {offsets = [0, 64], sizes = [8, 32], strides = [1, 1]} : vector<8x128xf32> to vector<8x32xf32>
    %83 = vector.extract_strided_slice %79 {offsets = [0, 96], sizes = [8, 32], strides = [1, 1]} : vector<8x128xf32> to vector<8x32xf32>
    %84 = arith.mulf %81, %62 : vector<8x32xf32>
    %85 = arith.mulf %80, %82 : vector<8x32xf32>
    %86 = arith.addf %84, %85 : vector<8x32xf32>
    %87 = math.tanh %86 : vector<8x32xf32>
    %88 = arith.mulf %83, %87 : vector<8x32xf32>
    %89 = vector.extract_strided_slice %14 {offsets = [0, 3], sizes = [8, 1], strides = [1, 1]} : vector<8x8xf32> to vector<8x1xf32>
    %90 = vector.broadcast %89 : vector<8x1xf32> to vector<8x128xf32>
    %91 = vector.broadcast %3 : vector<1x128xf32> to vector<8x128xf32>
    %92 = arith.mulf %90, %91 : vector<8x128xf32>
    %93 = vector.broadcast %4 : vector<1x128xf32> to vector<8x128xf32>
    %94 = arith.addf %92, %93 : vector<8x128xf32>
    %cst_7 = arith.constant dense<0.000000e+00> : vector<8x128xf32>
    %95 = tpu.matmul %88, %1, %cst_7 {dimension_numbers = #tpu.dot_dimension_numbers<[1], [0], [0], [1], [0, 0, 1, 1], [], []>} : vector<8x32xf32>, vector<32x128xf32>, vector<8x128xf32> -> vector<8x128xf32>
    %96 = arith.addf %94, %95 : vector<8x128xf32>
    %97 = vector.broadcast %12 : vector<1x128xf32> to vector<8x128xf32>
    %98 = arith.mulf %96, %97 : vector<8x128xf32>
    %99 = math.tanh %98 : vector<8x128xf32>
    %100 = vector.broadcast %12 : vector<1x128xf32> to vector<8x128xf32>
    %101 = arith.mulf %99, %100 : vector<8x128xf32>
    %102 = vector.broadcast %13 : vector<1x128xf32> to vector<8x128xf32>
    %103 = arith.addf %101, %102 : vector<8x128xf32>
    %104 = vector.extract_strided_slice %103 {offsets = [0, 0], sizes = [8, 32], strides = [1, 1]} : vector<8x128xf32> to vector<8x32xf32>
    %105 = vector.extract_strided_slice %103 {offsets = [0, 32], sizes = [8, 32], strides = [1, 1]} : vector<8x128xf32> to vector<8x32xf32>
    %106 = vector.extract_strided_slice %103 {offsets = [0, 64], sizes = [8, 32], strides = [1, 1]} : vector<8x128xf32> to vector<8x32xf32>
    %107 = vector.extract_strided_slice %103 {offsets = [0, 96], sizes = [8, 32], strides = [1, 1]} : vector<8x128xf32> to vector<8x32xf32>
    %108 = arith.mulf %105, %86 : vector<8x32xf32>
    %109 = arith.mulf %104, %106 : vector<8x32xf32>
    %110 = arith.addf %108, %109 : vector<8x32xf32>
    %111 = math.tanh %110 : vector<8x32xf32>
    %112 = arith.mulf %107, %111 : vector<8x32xf32>
    %113 = vector.extract_strided_slice %14 {offsets = [0, 4], sizes = [8, 1], strides = [1, 1]} : vector<8x8xf32> to vector<8x1xf32>
    %114 = vector.broadcast %113 : vector<8x1xf32> to vector<8x128xf32>
    %115 = vector.broadcast %3 : vector<1x128xf32> to vector<8x128xf32>
    %116 = arith.mulf %114, %115 : vector<8x128xf32>
    %117 = vector.broadcast %4 : vector<1x128xf32> to vector<8x128xf32>
    %118 = arith.addf %116, %117 : vector<8x128xf32>
    %cst_8 = arith.constant dense<0.000000e+00> : vector<8x128xf32>
    %119 = tpu.matmul %112, %1, %cst_8 {dimension_numbers = #tpu.dot_dimension_numbers<[1], [0], [0], [1], [0, 0, 1, 1], [], []>} : vector<8x32xf32>, vector<32x128xf32>, vector<8x128xf32> -> vector<8x128xf32>
    %120 = arith.addf %118, %119 : vector<8x128xf32>
    %121 = vector.broadcast %12 : vector<1x128xf32> to vector<8x128xf32>
    %122 = arith.mulf %120, %121 : vector<8x128xf32>
    %123 = math.tanh %122 : vector<8x128xf32>
    %124 = vector.broadcast %12 : vector<1x128xf32> to vector<8x128xf32>
    %125 = arith.mulf %123, %124 : vector<8x128xf32>
    %126 = vector.broadcast %13 : vector<1x128xf32> to vector<8x128xf32>
    %127 = arith.addf %125, %126 : vector<8x128xf32>
    %128 = vector.extract_strided_slice %127 {offsets = [0, 0], sizes = [8, 32], strides = [1, 1]} : vector<8x128xf32> to vector<8x32xf32>
    %129 = vector.extract_strided_slice %127 {offsets = [0, 32], sizes = [8, 32], strides = [1, 1]} : vector<8x128xf32> to vector<8x32xf32>
    %130 = vector.extract_strided_slice %127 {offsets = [0, 64], sizes = [8, 32], strides = [1, 1]} : vector<8x128xf32> to vector<8x32xf32>
    %131 = vector.extract_strided_slice %127 {offsets = [0, 96], sizes = [8, 32], strides = [1, 1]} : vector<8x128xf32> to vector<8x32xf32>
    %132 = arith.mulf %129, %110 : vector<8x32xf32>
    %133 = arith.mulf %128, %130 : vector<8x32xf32>
    %134 = arith.addf %132, %133 : vector<8x32xf32>
    %135 = math.tanh %134 : vector<8x32xf32>
    %136 = arith.mulf %131, %135 : vector<8x32xf32>
    %137 = vector.extract_strided_slice %14 {offsets = [0, 5], sizes = [8, 1], strides = [1, 1]} : vector<8x8xf32> to vector<8x1xf32>
    %138 = vector.broadcast %137 : vector<8x1xf32> to vector<8x128xf32>
    %139 = vector.broadcast %3 : vector<1x128xf32> to vector<8x128xf32>
    %140 = arith.mulf %138, %139 : vector<8x128xf32>
    %141 = vector.broadcast %4 : vector<1x128xf32> to vector<8x128xf32>
    %142 = arith.addf %140, %141 : vector<8x128xf32>
    %cst_9 = arith.constant dense<0.000000e+00> : vector<8x128xf32>
    %143 = tpu.matmul %136, %1, %cst_9 {dimension_numbers = #tpu.dot_dimension_numbers<[1], [0], [0], [1], [0, 0, 1, 1], [], []>} : vector<8x32xf32>, vector<32x128xf32>, vector<8x128xf32> -> vector<8x128xf32>
    %144 = arith.addf %142, %143 : vector<8x128xf32>
    %145 = vector.broadcast %12 : vector<1x128xf32> to vector<8x128xf32>
    %146 = arith.mulf %144, %145 : vector<8x128xf32>
    %147 = math.tanh %146 : vector<8x128xf32>
    %148 = vector.broadcast %12 : vector<1x128xf32> to vector<8x128xf32>
    %149 = arith.mulf %147, %148 : vector<8x128xf32>
    %150 = vector.broadcast %13 : vector<1x128xf32> to vector<8x128xf32>
    %151 = arith.addf %149, %150 : vector<8x128xf32>
    %152 = vector.extract_strided_slice %151 {offsets = [0, 0], sizes = [8, 32], strides = [1, 1]} : vector<8x128xf32> to vector<8x32xf32>
    %153 = vector.extract_strided_slice %151 {offsets = [0, 32], sizes = [8, 32], strides = [1, 1]} : vector<8x128xf32> to vector<8x32xf32>
    %154 = vector.extract_strided_slice %151 {offsets = [0, 64], sizes = [8, 32], strides = [1, 1]} : vector<8x128xf32> to vector<8x32xf32>
    %155 = vector.extract_strided_slice %151 {offsets = [0, 96], sizes = [8, 32], strides = [1, 1]} : vector<8x128xf32> to vector<8x32xf32>
    %156 = arith.mulf %153, %134 : vector<8x32xf32>
    %157 = arith.mulf %152, %154 : vector<8x32xf32>
    %158 = arith.addf %156, %157 : vector<8x32xf32>
    %159 = math.tanh %158 : vector<8x32xf32>
    %160 = arith.mulf %155, %159 : vector<8x32xf32>
    %161 = vector.extract_strided_slice %14 {offsets = [0, 6], sizes = [8, 1], strides = [1, 1]} : vector<8x8xf32> to vector<8x1xf32>
    %162 = vector.broadcast %161 : vector<8x1xf32> to vector<8x128xf32>
    %163 = vector.broadcast %3 : vector<1x128xf32> to vector<8x128xf32>
    %164 = arith.mulf %162, %163 : vector<8x128xf32>
    %165 = vector.broadcast %4 : vector<1x128xf32> to vector<8x128xf32>
    %166 = arith.addf %164, %165 : vector<8x128xf32>
    %cst_10 = arith.constant dense<0.000000e+00> : vector<8x128xf32>
    %167 = tpu.matmul %160, %1, %cst_10 {dimension_numbers = #tpu.dot_dimension_numbers<[1], [0], [0], [1], [0, 0, 1, 1], [], []>} : vector<8x32xf32>, vector<32x128xf32>, vector<8x128xf32> -> vector<8x128xf32>
    %168 = arith.addf %166, %167 : vector<8x128xf32>
    %169 = vector.broadcast %12 : vector<1x128xf32> to vector<8x128xf32>
    %170 = arith.mulf %168, %169 : vector<8x128xf32>
    %171 = math.tanh %170 : vector<8x128xf32>
    %172 = vector.broadcast %12 : vector<1x128xf32> to vector<8x128xf32>
    %173 = arith.mulf %171, %172 : vector<8x128xf32>
    %174 = vector.broadcast %13 : vector<1x128xf32> to vector<8x128xf32>
    %175 = arith.addf %173, %174 : vector<8x128xf32>
    %176 = vector.extract_strided_slice %175 {offsets = [0, 0], sizes = [8, 32], strides = [1, 1]} : vector<8x128xf32> to vector<8x32xf32>
    %177 = vector.extract_strided_slice %175 {offsets = [0, 32], sizes = [8, 32], strides = [1, 1]} : vector<8x128xf32> to vector<8x32xf32>
    %178 = vector.extract_strided_slice %175 {offsets = [0, 64], sizes = [8, 32], strides = [1, 1]} : vector<8x128xf32> to vector<8x32xf32>
    %179 = vector.extract_strided_slice %175 {offsets = [0, 96], sizes = [8, 32], strides = [1, 1]} : vector<8x128xf32> to vector<8x32xf32>
    %180 = arith.mulf %177, %158 : vector<8x32xf32>
    %181 = arith.mulf %176, %178 : vector<8x32xf32>
    %182 = arith.addf %180, %181 : vector<8x32xf32>
    %183 = math.tanh %182 : vector<8x32xf32>
    %184 = arith.mulf %179, %183 : vector<8x32xf32>
    %185 = vector.extract_strided_slice %14 {offsets = [0, 7], sizes = [8, 1], strides = [1, 1]} : vector<8x8xf32> to vector<8x1xf32>
    %186 = vector.broadcast %185 : vector<8x1xf32> to vector<8x128xf32>
    %187 = vector.broadcast %3 : vector<1x128xf32> to vector<8x128xf32>
    %188 = arith.mulf %186, %187 : vector<8x128xf32>
    %189 = vector.broadcast %4 : vector<1x128xf32> to vector<8x128xf32>
    %190 = arith.addf %188, %189 : vector<8x128xf32>
    %cst_11 = arith.constant dense<0.000000e+00> : vector<8x128xf32>
    %191 = tpu.matmul %184, %1, %cst_11 {dimension_numbers = #tpu.dot_dimension_numbers<[1], [0], [0], [1], [0, 0, 1, 1], [], []>} : vector<8x32xf32>, vector<32x128xf32>, vector<8x128xf32> -> vector<8x128xf32>
    %192 = arith.addf %190, %191 : vector<8x128xf32>
    %193 = vector.broadcast %12 : vector<1x128xf32> to vector<8x128xf32>
    %194 = arith.mulf %192, %193 : vector<8x128xf32>
    %195 = math.tanh %194 : vector<8x128xf32>
    %196 = vector.broadcast %12 : vector<1x128xf32> to vector<8x128xf32>
    %197 = arith.mulf %195, %196 : vector<8x128xf32>
    %198 = vector.broadcast %13 : vector<1x128xf32> to vector<8x128xf32>
    %199 = arith.addf %197, %198 : vector<8x128xf32>
    %200 = vector.extract_strided_slice %199 {offsets = [0, 0], sizes = [8, 32], strides = [1, 1]} : vector<8x128xf32> to vector<8x32xf32>
    %201 = vector.extract_strided_slice %199 {offsets = [0, 32], sizes = [8, 32], strides = [1, 1]} : vector<8x128xf32> to vector<8x32xf32>
    %202 = vector.extract_strided_slice %199 {offsets = [0, 64], sizes = [8, 32], strides = [1, 1]} : vector<8x128xf32> to vector<8x32xf32>
    %203 = vector.extract_strided_slice %199 {offsets = [0, 96], sizes = [8, 32], strides = [1, 1]} : vector<8x128xf32> to vector<8x32xf32>
    %204 = arith.mulf %201, %182 : vector<8x32xf32>
    %205 = arith.mulf %200, %202 : vector<8x32xf32>
    %206 = arith.addf %204, %205 : vector<8x32xf32>
    %207 = math.tanh %206 : vector<8x32xf32>
    %208 = arith.mulf %203, %207 : vector<8x32xf32>
    %cst_12 = arith.constant dense<0.000000e+00> : vector<32xf32>
    %209 = vector.multi_reduction <add>, %208, %cst_12 [0] : vector<8x32xf32> to vector<32xf32>
    %210 = vector.shape_cast %209 : vector<32xf32> to vector<1x32xf32>
    %cst_13 = arith.constant 8.000000e+00 : f32
    %211 = vector.broadcast %cst_13 : f32 to vector<1x32xf32>
    %212 = arith.divf %210, %211 : vector<1x32xf32>
    %213 = vector.broadcast %212 : vector<1x32xf32> to vector<8x32xf32>
    %214 = arith.subf %208, %213 : vector<8x32xf32>
    %215 = arith.mulf %214, %214 : vector<8x32xf32>
    %cst_14 = arith.constant dense<0.000000e+00> : vector<32xf32>
    %216 = vector.multi_reduction <add>, %215, %cst_14 [0] : vector<8x32xf32> to vector<32xf32>
    %217 = vector.shape_cast %216 : vector<32xf32> to vector<1x32xf32>
    %cst_15 = arith.constant 8.000000e+00 : f32
    %218 = vector.broadcast %cst_15 : f32 to vector<1x32xf32>
    %219 = arith.divf %217, %218 : vector<1x32xf32>
    %220 = vector.broadcast %212 : vector<1x32xf32> to vector<8x32xf32>
    %221 = arith.subf %208, %220 : vector<8x32xf32>
    %cst_16 = arith.constant 9.99999974E-6 : f32
    %222 = vector.broadcast %cst_16 : f32 to vector<1x32xf32>
    %223 = arith.addf %219, %222 : vector<1x32xf32>
    %224 = math.rsqrt %223 : vector<1x32xf32>
    %225 = vector.broadcast %224 : vector<1x32xf32> to vector<8x32xf32>
    %226 = arith.mulf %221, %225 : vector<8x32xf32>
    %227 = vector.broadcast %5 : vector<1x32xf32> to vector<8x32xf32>
    %228 = arith.mulf %226, %227 : vector<8x32xf32>
    %229 = vector.broadcast %6 : vector<1x32xf32> to vector<8x32xf32>
    %230 = arith.addf %228, %229 : vector<8x32xf32>
    %cst_17 = arith.constant 0.000000e+00 : f32
    %231 = vector.broadcast %cst_17 : f32 to vector<8x32xf32>
    %232 = arith.cmpf oge, %230, %231 : vector<8x32xf32>
    %cst_18 = arith.constant 0.00999999977 : f32
    %233 = vector.broadcast %cst_18 : f32 to vector<8x32xf32>
    %234 = arith.mulf %233, %230 : vector<8x32xf32>
    %235 = arith.select %232, %230, %234 : vector<8x32xi1>, vector<8x32xf32>
    %cst_19 = arith.constant dense<0.000000e+00> : vector<8x128xf32>
    %236 = tpu.matmul %235, %2, %cst_19 {dimension_numbers = #tpu.dot_dimension_numbers<[1], [0], [0], [1], [0, 0, 1, 1], [], []>} : vector<8x32xf32>, vector<32x128xf32>, vector<8x128xf32> -> vector<8x128xf32>
    %237 = vector.broadcast %7 : vector<1x128xf32> to vector<8x128xf32>
    %238 = arith.addf %236, %237 : vector<8x128xf32>
    %cst_20 = arith.constant dense<0.000000e+00> : vector<128xf32>
    %239 = vector.multi_reduction <add>, %238, %cst_20 [0] : vector<8x128xf32> to vector<128xf32>
    %240 = vector.shape_cast %239 : vector<128xf32> to vector<1x128xf32>
    %cst_21 = arith.constant 8.000000e+00 : f32
    %241 = vector.broadcast %cst_21 : f32 to vector<1x128xf32>
    %242 = arith.divf %240, %241 : vector<1x128xf32>
    %243 = vector.broadcast %242 : vector<1x128xf32> to vector<8x128xf32>
    %244 = arith.subf %238, %243 : vector<8x128xf32>
    %245 = arith.mulf %244, %244 : vector<8x128xf32>
    %cst_22 = arith.constant dense<0.000000e+00> : vector<128xf32>
    %246 = vector.multi_reduction <add>, %245, %cst_22 [0] : vector<8x128xf32> to vector<128xf32>
    %247 = vector.shape_cast %246 : vector<128xf32> to vector<1x128xf32>
    %cst_23 = arith.constant 8.000000e+00 : f32
    %248 = vector.broadcast %cst_23 : f32 to vector<1x128xf32>
    %249 = arith.divf %247, %248 : vector<1x128xf32>
    %250 = vector.broadcast %242 : vector<1x128xf32> to vector<8x128xf32>
    %251 = arith.subf %238, %250 : vector<8x128xf32>
    %cst_24 = arith.constant 9.99999974E-6 : f32
    %252 = vector.broadcast %cst_24 : f32 to vector<1x128xf32>
    %253 = arith.addf %249, %252 : vector<1x128xf32>
    %254 = math.rsqrt %253 : vector<1x128xf32>
    %255 = vector.broadcast %254 : vector<1x128xf32> to vector<8x128xf32>
    %256 = arith.mulf %251, %255 : vector<8x128xf32>
    %257 = vector.broadcast %8 : vector<1x128xf32> to vector<8x128xf32>
    %258 = arith.mulf %256, %257 : vector<8x128xf32>
    %259 = vector.broadcast %9 : vector<1x128xf32> to vector<8x128xf32>
    %260 = arith.addf %258, %259 : vector<8x128xf32>
    %cst_25 = arith.constant 0.000000e+00 : f32
    %261 = vector.broadcast %cst_25 : f32 to vector<8x128xf32>
    %262 = arith.cmpf oge, %260, %261 : vector<8x128xf32>
    %cst_26 = arith.constant 0.00999999977 : f32
    %263 = vector.broadcast %cst_26 : f32 to vector<8x128xf32>
    %264 = arith.mulf %263, %260 : vector<8x128xf32>
    %265 = arith.select %262, %260, %264 : vector<8x128xi1>, vector<8x128xf32>
    %266 = vector.broadcast %10 : vector<1x128xf32> to vector<8x128xf32>
    %267 = arith.mulf %265, %266 : vector<8x128xf32>
    %cst_27 = arith.constant dense<0.000000e+00> : vector<8xf32>
    %268 = vector.multi_reduction <add>, %267, %cst_27 [1] : vector<8x128xf32> to vector<8xf32>
    %269 = vector.shape_cast %268 : vector<8xf32> to vector<8x1xf32>
    %270 = vector.broadcast %11 : vector<1x1xf32> to vector<8x1xf32>
    %271 = arith.addf %269, %270 : vector<8x1xf32>
    %c0_28 = arith.constant 0 : index
    %c0_29 = arith.constant 0 : index
    %272 = vector.load %arg2[%c0_28, %c0_29] : memref<8x1xf32, #tpu.memory_space<vmem>>, vector<8x1xf32>
    tpu.vector_store %arg2[%c0_28, %c0_29], %271 {strides = array<i32>} : memref<8x1xf32, #tpu.memory_space<vmem>>, vector<8x1xf32>,
    return
  }
}

</mosaic_0001>

<bundles_post_ra>
// kernel: lstm_base_forward.1
= control target key start
LH: loop header
LB: loop body
LE: loop exit
PB: predicated region body
PF: predicated region fallthrough
CT: control target
= control target key end

     0   :  { %7 = vsyncpa [#allocation3], 0  ;;  %s1634_s0 = inlined_call_operand.hbm [shape: f32[8,8], index: 0, kind: input, shape index: {}]   ;;  %s1635_s1 = inlined_call_operand.hbm [shape: f32[80,128], index: 1, kind: input, shape index: {}]   ;;  %s1636_s2 = inlined_call_operand.vmem [shape: f32[8,1], index: 2, kind: output, shape index: {}]  }
   0x1   :  { %8 = vsyncpa [#allocation5], 0  ;;  %s1379_s9 = smov [#allocation2]   ;;  %s1380_s11 = smov [#allocation4]  }
   0x2   :  { %s15_s10 = sshll.u32 %s1379_s9, 4  ;;  %s24_s12 = sshll.u32 %s1380_s11, 4  ;;  %s16_s10 = int_to_ptr.vmem [resolvable:$true] %s15_s10  ;;  %s1412_s12 = int_to_ptr.vmem [resolvable:$true] %s24_s12 }
   0x3   :  { %s1331_s15 = scalar_lea.hbm %s1634_s0, 128 }
   0x4   :  { %p1332_p0 = scmp.ne.s32.totalorder %s1634_s0, %s1331_s15  ;;  %p1335_p1 = scmp.lt.u32.totalorder %s1331_s15, %s1634_s0 }
   0x6   :  { %p1337_p2 = pnand %p1335_p1, %p1332_p0 }
   0x8   :  { %1340 = shalt.err (!%p1337_p2)
}
   0x9   :  { %s1341_s20 = scalar_lea.vmem %s16_s10, 128  ;;  %p1346_p4 = scmp.lt.s32.totalorder %s16_s10, %s16_s10 }
   0xa   :  { %p1342_p3 = scmp.ne.s32.totalorder %s16_s10, %s1341_s20  ;;  %p1347_p5 = scmp.lt.s32.totalorder %s1341_s20, %s1341_s20 }
   0xc   :  { %p1348_p6 = por %p1347_p5, %p1346_p4 }
   0xe   :  { %p1349_p7 = pnand %p1348_p6, %p1342_p3 }
  0x10   :  { %1352 = shalt.err (!%p1349_p7)
}
  0x11   :  { %18 = dma.hbm_to_vmem [thread:$0]  %s1634_s0, 128, %s16_s10, [#allocation3]  }
  0x12   :  { %s1353_s25 = scalar_lea.hbm %s1635_s1, 1280 }
  0x13   :  { %p1354_p8 = scmp.ne.s32.totalorder %s1635_s1, %s1353_s25  ;;  %p1357_p9 = scmp.lt.u32.totalorder %s1353_s25, %s1635_s1 }
  0x15   :  { %p1359_p10 = pnand %p1357_p9, %p1354_p8 }
  0x17   :  { %1362 = shalt.err (!%p1359_p10)
}
  0x18   :  { %s1363_s30 = scalar_lea.vmem %s1412_s12, 1280  ;;  %p1368_p12 = scmp.lt.s32.totalorder %s1412_s12, %s1412_s12 }
  0x19   :  { %p1364_p11 = scmp.ne.s32.totalorder %s1412_s12, %s1363_s30  ;;  %p1369_p13 = scmp.lt.s32.totalorder %s1363_s30, %s1363_s30 }
  0x1b   :  { %p1370_p0 = por %p1369_p13, %p1368_p12 }
  0x1d   :  { %p1371_p1 = pnand %p1370_p0, %p1364_p11 }
  0x1f   :  { %1374 = shalt.err (!%p1371_p1)
}
  0x20   :  { %s1381_s0 = smov 128   ;;  %s1382_s3 = smov 8  }
  0x21   :  { %30 = dma.hbm_to_vmem [thread:$0]  %s1635_s1, 1280, %s1412_s12, [#allocation5], %s1381_s0, %s1381_s0, %s1382_s3  }
  0x22   :  { %1375 = dma.done.wait [#allocation3], 128  }
  0x23   :  { %1376 = vsyncadd [#allocation3], 4294967168 }
  0x24   :  { %1377 = dma.done.wait [#allocation5], 1280  }
  0x25   :  { %1378 = vsyncadd [#allocation5], 4294966016  ;;  %v1383_v0 = vmov 0.0|0.0   ;;  %vm1384_vm0 = vmmov 0   ;;  %v1385_v1 = vmov 0.0   ;;  %v1386_v2 = vmov 0  }
  0x26   :  { %1215 = vmatprep.subr.bf16.mxu0 %v1383_v0  ;;  %1124 = vmatprep.mubr.msk.f32.mxu0 %vm1384_vm0, %v1385_v1  ;;  %v37_v3 = vld [vmem:[#allocation4] sm:$0xff]  ;;  %v38_v4 = vld [vmem:[#allocation4 + $0x8] sm:$0xff]  ;;  %v39_v5 = vld [vmem:[#allocation4 + $0x10] sm:$0xff]  ;;  %v53_v10 = vlaneseq  ;;  %s1387_s1 = smov 64   ;;  %s1388_s6 = smov 32   ;;  %v1389_v37 = vmov 1  }
  0x27   :  { %1287 = vset.pattern.permute.xlu0 %v1386_v2  ;;  %1221 = vmatprep.subr.bf16.mxu1 %v1383_v0  ;;  %v1449_v6 = vpack.c.bf16 %v38_v4, %v37_v3  ;;  %v40_v7 = vld [vmem:[#allocation4 + $0x18] sm:$0xff]  ;;  %v1474_v13 = vld [vmem:[#allocation4 + $0x40] sm:$0xff]  ;;  %v1486_v19 = vld [vmem:[#allocation4 + $0x48] sm:$0xff]  ;;  %vm63_vm1 = vcmask 261120   ;;  %v1390_v57 = vmov 2   ;;  %s1396_s7 = smov 96  }
  0x28   :  { %1135 = vmatprep.mubr.msk.f32.mxu1 %vm1384_vm0, %v1385_v1  ;;  %v1451_v8 = vld [vmem:[#allocation2] sm:$0xff]  ;;  %v1455_v9 = vpack.c.bf16 %v40_v7, %v39_v5  ;;  %v1471_v11 = vshrl.u32 %v53_v10, 7  ;;  %1288 = vset.pattern.permute.xlu1 %v1389_v37  ;;  %vm888_vm2 = vcmask 1048320   ;;  %vm1055_vm5 = vcmask 7168  }
  0x29   :  { %50 = vperm.xlu0 %1287, %v1451_v8   ;;  %1217 = vmatpush3.bf16.msra.mxu0 %v1449_v6 }
  0x2a   :  { %1223 = vmatpush3.bf16.msra.mxu1 %v1449_v6  ;;  %1218 = vmatprep.subr.bf16.mxu0 %v1383_v0  ;;  %v55_v12 = vsub.s32 0, %v1471_v11  ;;  %v60_v15 = vsub.s32 1, %v1471_v11  ;;  %v147_v26 = vsub.s32 2, %v1471_v11 }
  0x2b   :  { %1224 = vmatprep.subr.bf16.mxu1 %v1383_v0 }
  0x2c   :  { %v1479_v14 = vrot.slane %v1474_v13, %v55_v12  ;;  %v1484_v18 = vrot.slane %v1474_v13, %v60_v15  ;;  %v1490_v21 = vrot.slane %v1486_v19, %v60_v15  ;;  %v1497_v27 = vrot.slane %v1486_v19, %v147_v26 }
  0x2d   :  { %1220 = vmatpush3.bf16.msra.mxu0 %v1455_v9  ;;  %1289 = vset.pattern.permute.xlu0 %v1390_v57 }
  0x2e   :  { %1226 = vmatpush3.bf16.msra.mxu1 %v1455_v9  ;;  %1227 = vmatprep.subr.bf16.mxu0 %v1383_v0 }
  0x2f   :  { %1233 = vmatprep.subr.bf16.mxu1 %v1383_v0 }
  0x30   :  { %1125 = vmatmul.mubr.f32.vlgmr.msra.gmra.mrb[0].mxu0 %v1385_v1 }
  0x31   :  { %1229 = vmatpush3.bf16.msra.mxu0 %v1449_v6  ;;  %1146 = vmatprep.mubr.msk.f32.mxu0 %vm1384_vm0, %v1385_v1 }
  0x32   :  { %1230 = vmatprep.subr.bf16.mxu0 %v1383_v0 }
  0x35   :  { %1232 = vmatpush3.bf16.msra.mxu0 %v1455_v9 }
  0x36   :  { %1239 = vmatprep.subr.bf16.mxu0 %v1383_v0 }
  0xa8   :  { %v51_v16 = vpop.permute.xlu0 %50 }
  0xa9   :  { %v57_v17 = vmul.f32 %v1479_v14, %v51_v16 }
  0xab   :  { %v62_v20 = vadd.f32 %v1484_v18, %v57_v17 }
 0x103   :  { %v133_v22 = vpop.f32.mrb[0].mxu0 }
 0x104   :  { %v137_v23 = vadd.f32 %v133_v22, %v62_v20  ;;  %v1126_v24 = vpop.f32.mrb[1].mxu0 }
 0x106   :  { %v142_v25 = vmul.f32 %v1490_v21, %v137_v23 }
 0x108   :  { %1295 = vtanh.f32 %v142_v25  ;;  %v1391_v25 = vmov 3  }
 0x112   :  { %v1296_v28 = vpop.eup %1295 }
 0x113   :  { %v144_v29 = vmul.f32 %v1296_v28, %v1490_v21 }
 0x115   :  { %v149_v30 = vadd.f32 %v1497_v27, %v144_v29 }
 0x117   :  { %152 = vrot.lane.b32.xlu0 %v149_v30, %s1387_s1  ;;  %v150_v33 = vmul.f32 0.0, %v149_v30 }
 0x189   :  { %v153_v31 = vpop.permute.xlu0 %152 }
 0x18a   :  { %v155_v32 = vmul.f32 %v153_v31, %v149_v30 }
 0x18c   :  { %157 = vrot.lane.b32.xlu1 %v155_v32, %s1388_s6 }
 0x1fe   :  { %v158_v34 = vpop.permute.xlu1 %157 }
 0x1ff   :  { %v160_v35 = vadd.f32 %v158_v34, %v150_v33 }
 0x201   :  { %1297 = vtanh.f32 %v160_v35 }
 0x20b   :  { %v1298_v36 = vpop.eup %1297 }
 0x20c   :  { %163 = vrot.lane.b32.xlu1 %v1298_v36, %s1387_s1 }
 0x210   :  { %168 = vperm.xlu1 %1288, %v1451_v8  }
 0x27e   :  { %v164_v38 = vpop.permute.xlu1 %163 }
 0x27f   :  { %v166_v39 = vmul.f32 %v164_v38, %v149_v30 }
 0x281   :  { %174 = vrot.lane.b32.xlu0 %v166_v39, %s1388_s6 }
 0x28f   :  { %v169_v41 = vpop.permute.xlu1 %168 }
 0x290   :  { %v171_v42 = vmul.f32 %v169_v41, %v1479_v14 }
 0x292   :  { %v172_v43 = vadd.f32 %v171_v42, %v1484_v18 }
 0x2f3   :  { %v175_v40 = vpop.permute.xlu0 %174 }
 0x2f4   :  { %1136 = vmatmul.mubr.msk.f32.vlgmr.msra.gmra.mrb[0].mxu1 %vm63_vm1, %v175_v40 }
 0x2f5   :  { %1235 = vmatpush3.bf16.msra.mxu1 %v1449_v6  ;;  %1157 = vmatprep.mubr.msk.f32.mxu1 %vm1384_vm0, %v1385_v1 }
 0x2f6   :  { %1236 = vmatprep.subr.bf16.mxu1 %v1383_v0 }
 0x2f9   :  { %1238 = vmatpush3.bf16.msra.mxu1 %v1455_v9 }
 0x2fa   :  { %1245 = vmatprep.subr.bf16.mxu1 %v1383_v0 }
 0x3c7   :  { %v244_v44 = vpop.f32.mrb[0].mxu1 }
 0x3c8   :  { %v248_v45 = vadd.f32 %v244_v44, %v172_v43  ;;  %v1137_v46 = vpop.f32.mrb[1].mxu1 }
 0x3ca   :  { %v249_v47 = vmul.f32 %v248_v45, %v1490_v21 }
 0x3cc   :  { %1299 = vtanh.f32 %v249_v47  ;;  %v1392_v47 = vmov 4  }
 0x3d6   :  { %v1300_v48 = vpop.eup %1299 }
 0x3d7   :  { %v251_v49 = vmul.f32 %v1300_v48, %v1490_v21 }
 0x3d9   :  { %v252_v50 = vadd.f32 %v251_v49, %v1497_v27 }
 0x3db   :  { %255 = vrot.lane.b32.xlu0 %v252_v50, %s1387_s1  ;;  %v253_v53 = vmul.f32 %v252_v50, %v160_v35 }
 0x44d   :  { %v256_v51 = vpop.permute.xlu0 %255 }
 0x44e   :  { %v258_v52 = vmul.f32 %v256_v51, %v252_v50 }
 0x450   :  { %260 = vrot.lane.b32.xlu1 %v258_v52, %s1388_s6 }
 0x4c2   :  { %v261_v54 = vpop.permute.xlu1 %260 }
 0x4c3   :  { %v263_v55 = vadd.f32 %v261_v54, %v253_v53 }
 0x4c5   :  { %1301 = vtanh.f32 %v263_v55 }
 0x4cf   :  { %v1302_v56 = vpop.eup %1301 }
 0x4d0   :  { %266 = vrot.lane.b32.xlu0 %v1302_v56, %s1387_s1 }
 0x4d4   :  { %271 = vperm.xlu0 %1289, %v1451_v8  }
 0x4d8   :  { %1290 = vset.pattern.permute.xlu0 %v1391_v25 }
 0x542   :  { %v267_v58 = vpop.permute.xlu0 %266 }
 0x543   :  { %v269_v59 = vmul.f32 %v267_v58, %v252_v50 }
 0x545   :  { %277 = vrot.lane.b32.xlu1 %v269_v59, %s1388_s6 }
 0x553   :  { %v272_v61 = vpop.permute.xlu0 %271 }
 0x554   :  { %v274_v62 = vmul.f32 %v272_v61, %v1479_v14 }
 0x556   :  { %v275_v63 = vadd.f32 %v274_v62, %v1484_v18 }
 0x5b7   :  { %v278_v60 = vpop.permute.xlu1 %277 }
 0x5b8   :  { %1147 = vmatmul.mubr.msk.f32.vlgmr.msra.gmra.mrb[2].mxu0 %vm63_vm1, %v278_v60 }
 0x5b9   :  { %1241 = vmatpush3.bf16.msra.mxu0 %v1449_v6  ;;  %1168 = vmatprep.mubr.msk.f32.mxu0 %vm1384_vm0, %v1385_v1 }
 0x5ba   :  { %1242 = vmatprep.subr.bf16.mxu0 %v1383_v0 }
 0x5bd   :  { %1244 = vmatpush3.bf16.msra.mxu0 %v1455_v9 }
 0x5be   :  { %1251 = vmatprep.subr.bf16.mxu0 %v1383_v0 }
 0x68b   :  { %v347_v2 = vpop.f32.mrb[2].mxu0 }
 0x68c   :  { %v351_v3 = vadd.f32 %v347_v2, %v275_v63  ;;  %v1148_v4 = vpop.f32.mrb[3].mxu0 }
 0x68e   :  { %v352_v5 = vmul.f32 %v351_v3, %v1490_v21 }
 0x690   :  { %1303 = vtanh.f32 %v352_v5  ;;  %v1393_v5 = vmov 5  }
 0x69a   :  { %v1304_v7 = vpop.eup %1303 }
 0x69b   :  { %v354_v10 = vmul.f32 %v1304_v7, %v1490_v21 }
 0x69d   :  { %v355_v15 = vadd.f32 %v354_v10, %v1497_v27 }
 0x69f   :  { %358 = vrot.lane.b32.xlu1 %v355_v15, %s1387_s1  ;;  %v356_v20 = vmul.f32 %v355_v15, %v263_v55 }
 0x711   :  { %v359_v16 = vpop.permute.xlu1 %358 }
 0x712   :  { %v361_v17 = vmul.f32 %v359_v16, %v355_v15 }
 0x714   :  { %363 = vrot.lane.b32.xlu1 %v361_v17, %s1388_s6 }
 0x786   :  { %v364_v22 = vpop.permute.xlu1 %363 }
 0x787   :  { %v366_v23 = vadd.f32 %v364_v22, %v356_v20 }
 0x789   :  { %1305 = vtanh.f32 %v366_v23 }
 0x793   :  { %v1306_v24 = vpop.eup %1305 }
 0x794   :  { %369 = vrot.lane.b32.xlu0 %v1306_v24, %s1387_s1 }
 0x798   :  { %374 = vperm.xlu0 %1290, %v1451_v8  }
 0x79c   :  { %1291 = vset.pattern.permute.xlu0 %v1392_v47 }
 0x806   :  { %v370_v28 = vpop.permute.xlu0 %369 }
 0x807   :  { %v372_v29 = vmul.f32 %v370_v28, %v355_v15 }
 0x809   :  { %380 = vrot.lane.b32.xlu1 %v372_v29, %s1388_s6 }
 0x817   :  { %v375_v31 = vpop.permute.xlu0 %374 }
 0x818   :  { %v377_v32 = vmul.f32 %v375_v31, %v1479_v14 }
 0x81a   :  { %v378_v33 = vadd.f32 %v377_v32, %v1484_v18 }
 0x87b   :  { %v381_v30 = vpop.permute.xlu1 %380 }
 0x87c   :  { %1158 = vmatmul.mubr.msk.f32.vlgmr.msra.gmra.mrb[2].mxu1 %vm63_vm1, %v381_v30 }
 0x87d   :  { %1247 = vmatpush3.bf16.msra.mxu1 %v1449_v6  ;;  %1179 = vmatprep.mubr.msk.f32.mxu1 %vm1384_vm0, %v1385_v1 }
 0x87e   :  { %1248 = vmatprep.subr.bf16.mxu1 %v1383_v0 }
 0x881   :  { %1250 = vmatpush3.bf16.msra.mxu1 %v1455_v9 }
 0x882   :  { %1257 = vmatprep.subr.bf16.mxu1 %v1383_v0 }
 0x94f   :  { %v450_v34 = vpop.f32.mrb[2].mxu1 }
 0x950   :  { %v454_v35 = vadd.f32 %v450_v34, %v378_v33  ;;  %v1159_v36 = vpop.f32.mrb[3].mxu1 }
 0x952   :  { %v455_v37 = vmul.f32 %v454_v35, %v1490_v21  ;;  %v1394_v35 = vmov 6  }
 0x954   :  { %1307 = vtanh.f32 %v455_v37 }
 0x95e   :  { %v1308_v38 = vpop.eup %1307 }
 0x95f   :  { %v457_v39 = vmul.f32 %v1308_v38, %v1490_v21 }
 0x961   :  { %v458_v40 = vadd.f32 %v457_v39, %v1497_v27 }
 0x963   :  { %461 = vrot.lane.b32.xlu1 %v458_v40, %s1387_s1  ;;  %v459_v43 = vmul.f32 %v458_v40, %v366_v23 }
 0x9d5   :  { %v462_v41 = vpop.permute.xlu1 %461 }
 0x9d6   :  { %v464_v42 = vmul.f32 %v462_v41, %v458_v40 }
 0x9d8   :  { %466 = vrot.lane.b32.xlu1 %v464_v42, %s1388_s6 }
 0xa4a   :  { %v467_v44 = vpop.permute.xlu1 %466 }
 0xa4b   :  { %v469_v45 = vadd.f32 %v467_v44, %v459_v43 }
 0xa4d   :  { %1309 = vtanh.f32 %v469_v45 }
 0xa57   :  { %v1310_v46 = vpop.eup %1309 }
 0xa58   :  { %472 = vrot.lane.b32.xlu0 %v1310_v46, %s1387_s1 }
 0xa5c   :  { %477 = vperm.xlu0 %1291, %v1451_v8  }
 0xa60   :  { %1292 = vset.pattern.permute.xlu0 %v1393_v5 }
 0xaca   :  { %v473_v48 = vpop.permute.xlu0 %472 }
 0xacb   :  { %v475_v49 = vmul.f32 %v473_v48, %v458_v40 }
 0xacd   :  { %483 = vrot.lane.b32.xlu1 %v475_v49, %s1388_s6 }
 0xadb   :  { %v478_v51 = vpop.permute.xlu0 %477 }
 0xadc   :  { %v480_v52 = vmul.f32 %v478_v51, %v1479_v14 }
 0xade   :  { %v481_v53 = vadd.f32 %v480_v52, %v1484_v18 }
 0xb3f   :  { %v484_v50 = vpop.permute.xlu1 %483 }
 0xb40   :  { %1169 = vmatmul.mubr.msk.f32.vlgmr.msra.gmra.mrb[4].mxu0 %vm63_vm1, %v484_v50 }
 0xb41   :  { %1253 = vmatpush3.bf16.msra.mxu0 %v1449_v6  ;;  %1190 = vmatprep.mubr.msk.f32.mxu0 %vm1384_vm0, %v1385_v1 }
 0xb42   :  { %1254 = vmatprep.subr.bf16.mxu0 %v1383_v0 }
 0xb45   :  { %1256 = vmatpush3.bf16.msra.mxu0 %v1455_v9 }
 0xb46   :  { %1263 = vmatprep.subr.bf16.mxu0 %v1383_v0 }
 0xc13   :  { %v553_v54 = vpop.f32.mrb[4].mxu0 }
 0xc14   :  { %v557_v55 = vadd.f32 %v553_v54, %v481_v53  ;;  %v1170_v56 = vpop.f32.mrb[5].mxu0  ;;  %v1395_v54 = vmov 7  }
 0xc16   :  { %v558_v57 = vmul.f32 %v557_v55, %v1490_v21 }
 0xc18   :  { %1311 = vtanh.f32 %v558_v57 }
 0xc22   :  { %v1312_v58 = vpop.eup %1311 }
 0xc23   :  { %v560_v59 = vmul.f32 %v1312_v58, %v1490_v21 }
 0xc25   :  { %v561_v60 = vadd.f32 %v560_v59, %v1497_v27 }
 0xc27   :  { %564 = vrot.lane.b32.xlu1 %v561_v60, %s1387_s1  ;;  %v562_v63 = vmul.f32 %v561_v60, %v469_v45 }
 0xc99   :  { %v565_v61 = vpop.permute.xlu1 %564 }
 0xc9a   :  { %v567_v62 = vmul.f32 %v565_v61, %v561_v60 }
 0xc9c   :  { %569 = vrot.lane.b32.xlu1 %v567_v62, %s1388_s6 }
 0xd0e   :  { %v570_v2 = vpop.permute.xlu1 %569 }
 0xd0f   :  { %v572_v3 = vadd.f32 %v570_v2, %v562_v63 }
 0xd11   :  { %1313 = vtanh.f32 %v572_v3 }
 0xd1b   :  { %v1314_v4 = vpop.eup %1313 }
 0xd1c   :  { %575 = vrot.lane.b32.xlu0 %v1314_v4, %s1387_s1 }
 0xd20   :  { %580 = vperm.xlu0 %1292, %v1451_v8  }
 0xd24   :  { %1293 = vset.pattern.permute.xlu0 %v1394_v35 }
 0xd8e   :  { %v576_v7 = vpop.permute.xlu0 %575 }
 0xd8f   :  { %v578_v10 = vmul.f32 %v576_v7, %v561_v60 }
 0xd91   :  { %586 = vrot.lane.b32.xlu1 %v578_v10, %s1388_s6 }
 0xd9f   :  { %v581_v16 = vpop.permute.xlu0 %580 }
 0xda0   :  { %v583_v17 = vmul.f32 %v581_v16, %v1479_v14 }
 0xda2   :  { %v584_v20 = vadd.f32 %v583_v17, %v1484_v18  ;;  %v41_v17 = vld [vmem:[#allocation4 + $0x20] sm:$0xff] }
 0xe03   :  { %v587_v15 = vpop.permute.xlu1 %586 }
 0xe04   :  { %1180 = vmatmul.mubr.msk.f32.vlgmr.msra.gmra.mrb[4].mxu1 %vm63_vm1, %v587_v15 }
 0xe05   :  { %1259 = vmatpush3.bf16.msra.mxu1 %v1449_v6  ;;  %1201 = vmatprep.mubr.msk.f32.mxu1 %vm1384_vm0, %v1385_v1 }
 0xe06   :  { %1260 = vmatprep.subr.bf16.mxu1 %v1383_v0 }
 0xe09   :  { %1262 = vmatpush3.bf16.msra.mxu1 %v1455_v9 }
 0xed7   :  { %v656_v22 = vpop.f32.mrb[4].mxu1 }
 0xed8   :  { %v660_v23 = vadd.f32 %v656_v22, %v584_v20  ;;  %v1181_v24 = vpop.f32.mrb[5].mxu1  ;;  %v42_v20 = vld [vmem:[#allocation4 + $0x28] sm:$0xff]  ;;  %v43_v22 = vld [vmem:[#allocation4 + $0x30] sm:$0xff] }
 0xed9   :  { %v44_v24 = vld [vmem:[#allocation4 + $0x38] sm:$0xff] }
 0xeda   :  { %v661_v25 = vmul.f32 %v660_v23, %v1490_v21  ;;  %v1264_v23 = vpack.c.bf16 %v42_v20, %v41_v17 }
 0xedc   :  { %1315 = vtanh.f32 %v661_v25 }
 0xee6   :  { %v1316_v28 = vpop.eup %1315 }
 0xee7   :  { %v663_v6 = vmul.f32 %v1316_v28, %v1490_v21 }
 0xee9   :  { %v664_v29 = vadd.f32 %v663_v6, %v1497_v27 }
 0xeeb   :  { %667 = vrot.lane.b32.xlu1 %v664_v29, %s1387_s1  ;;  %v665_v31 = vmul.f32 %v664_v29, %v572_v3 }
 0xf5d   :  { %v668_v30 = vpop.permute.xlu1 %667 }
 0xf5e   :  { %v670_v9 = vmul.f32 %v668_v30, %v664_v29 }
 0xf60   :  { %672 = vrot.lane.b32.xlu1 %v670_v9, %s1388_s6 }
 0xfd2   :  { %v673_v32 = vpop.permute.xlu1 %672 }
 0xfd3   :  { %v675_v33 = vadd.f32 %v673_v32, %v665_v31 }
 0xfd5   :  { %1317 = vtanh.f32 %v675_v33 }
 0xfdf   :  { %v1318_v34 = vpop.eup %1317 }
 0xfe0   :  { %678 = vrot.lane.b32.xlu0 %v1318_v34, %s1387_s1 }
 0xfe4   :  { %683 = vperm.xlu0 %1293, %v1451_v8  }
 0xfe8   :  { %1294 = vset.pattern.permute.xlu0 %v1395_v54 }
0x1052   :  { %v679_v36 = vpop.permute.xlu0 %678 }
0x1053   :  { %v681_v37 = vmul.f32 %v679_v36, %v664_v29 }
0x1055   :  { %689 = vrot.lane.b32.xlu1 %v681_v37, %s1388_s6 }
0x1063   :  { %v684_v39 = vpop.permute.xlu0 %683 }
0x1064   :  { %v686_v40 = vmul.f32 %v684_v39, %v1479_v14 }
0x1066   :  { %v687_v41 = vadd.f32 %v686_v40, %v1484_v18 }
0x10c7   :  { %v690_v38 = vpop.permute.xlu1 %689 }
0x10c8   :  { %1191 = vmatmul.mubr.msk.f32.vlgmr.msra.gmra.mrb[6].mxu0 %vm63_vm1, %v690_v38 }
0x10c9   :  { %1212 = vmatprep.mubr.msk.f32.mxu0 %vm1384_vm0, %v1385_v1  ;;  %1265 = vmatpush3.bf16.msra.mxu0 %v1264_v23 }
0x10ca   :  { %1266 = vmatprep.subr.bf16.mxu0 %v1383_v0 }
0x119b   :  { %v759_v42 = vpop.f32.mrb[6].mxu0 }
0x119c   :  { %v763_v43 = vadd.f32 %v759_v42, %v687_v41  ;;  %v1192_v44 = vpop.f32.mrb[7].mxu0 }
0x119e   :  { %v764_v45 = vmul.f32 %v763_v43, %v1490_v21 }
0x11a0   :  { %1319 = vtanh.f32 %v764_v45 }
0x11aa   :  { %v1320_v46 = vpop.eup %1319 }
0x11ab   :  { %v766_v47 = vmul.f32 %v1320_v46, %v1490_v21 }
0x11ad   :  { %v767_v48 = vadd.f32 %v766_v47, %v1497_v27 }
0x11af   :  { %770 = vrot.lane.b32.xlu1 %v767_v48, %s1387_s1  ;;  %v768_v50 = vmul.f32 %v767_v48, %v675_v33 }
0x1221   :  { %v771_v49 = vpop.permute.xlu1 %770 }
0x1222   :  { %v773_v1 = vmul.f32 %v771_v49, %v767_v48 }
0x1224   :  { %775 = vrot.lane.b32.xlu1 %v773_v1, %s1388_s6 }
0x1296   :  { %v776_v51 = vpop.permute.xlu1 %775 }
0x1297   :  { %v778_v52 = vadd.f32 %v776_v51, %v768_v50 }
0x1299   :  { %1321 = vtanh.f32 %v778_v52 }
0x12a3   :  { %v1322_v53 = vpop.eup %1321 }
0x12a4   :  { %781 = vrot.lane.b32.xlu0 %v1322_v53, %s1387_s1  ;;  %v934_v53 = vsub.s32 4, %v1471_v11 }
0x12a6   :  { %v935_v54 = vrot.slane %v1474_v13, %v934_v53 }
0x12a8   :  { %786 = vperm.xlu0 %1294, %v1451_v8  }
0x1316   :  { %v782_v55 = vpop.permute.xlu0 %781 }
0x1317   :  { %v784_v56 = vmul.f32 %v782_v55, %v767_v48 }
0x1319   :  { %792 = vrot.lane.b32.xlu1 %v784_v56, %s1388_s6 }
0x1327   :  { %v787_v58 = vpop.permute.xlu0 %786 }
0x1328   :  { %v789_v59 = vmul.f32 %v787_v58, %v1479_v14  ;;  %v914_v14 = vrot.slane %v1474_v13, %v147_v26  ;;  %v1267_v26 = vpack.c.bf16 %v44_v24, %v43_v22  ;;  %v1045_v24 = vsub.s32 7, %v1471_v11 }
0x132a   :  { %v790_v60 = vadd.f32 %v789_v59, %v1484_v18  ;;  %1268 = vmatpush3.bf16.msra.mxu0 %v1267_v26 }
0x138b   :  { %v793_v57 = vpop.permute.xlu1 %792 }
0x138c   :  { %1202 = vmatmul.mubr.msk.f32.vlgmr.msra.gmra.mrb[6].mxu1 %vm63_vm1, %v793_v57 }
0x145f   :  { %v862_v61 = vpop.f32.mrb[6].mxu1 }
0x1460   :  { %v866_v62 = vadd.f32 %v862_v61, %v790_v60  ;;  %v1203_v63 = vpop.f32.mrb[7].mxu1 }
0x1462   :  { %v867_v2 = vmul.f32 %v866_v62, %v1490_v21 }
0x1464   :  { %1323 = vtanh.f32 %v867_v2 }
0x146e   :  { %v1324_v3 = vpop.eup %1323 }
0x146f   :  { %v869_v8 = vmul.f32 %v1324_v3, %v1490_v21  ;;  %v922_v21 = vsub.s32 3, %v1471_v11 }
0x1471   :  { %v870_v4 = vadd.f32 %v869_v8, %v1497_v27  ;;  %v923_v27 = vrot.slane %v1474_v13, %v922_v21 }
0x1473   :  { %873 = vrot.lane.b32.xlu1 %v870_v4, %s1387_s1  ;;  %v871_v18 = vmul.f32 %v870_v4, %v778_v52 }
0x14e5   :  { %v874_v5 = vpop.permute.xlu1 %873 }
0x14e6   :  { %v876_v7 = vmul.f32 %v874_v5, %v870_v4 }
0x14e8   :  { %878 = vrot.lane.b32.xlu1 %v876_v7, %s1388_s6 }
0x14ec   :  { %916 = vrot.lane.b32.xlu1 %v914_v14, %s1396_s7 }
0x155a   :  { %v879_v10 = vpop.permute.xlu1 %878 }
0x155b   :  { %v881_v15 = vadd.f32 %v879_v10, %v871_v18 }
0x155d   :  { %1325 = vtanh.f32 %v881_v15 }
0x155e   :  { %v917_v46 = vpop.permute.xlu1 %916 }
0x1567   :  { %v1326_v16 = vpop.eup %1325 }
0x1568   :  { %884 = vrot.lane.b32.xlu0 %v1326_v16, %s1387_s1  ;;  %v1032_v16 = vsub.s32 5, %v1471_v11 }
0x156a   :  { %v1033_v17 = vrot.slane %v1474_v13, %v1032_v16 }
0x156c   :  { %925 = vrot.lane.b32.xlu0 %v923_v27, %s1396_s7  ;;  %v1037_v27 = vsub.s32 6, %v1471_v11 }
0x156e   :  { %v1038_v23 = vrot.slane %v1474_v13, %v1037_v27 }
0x15da   :  { %v885_v25 = vpop.permute.xlu0 %884 }
0x15db   :  { %v887_v28 = vmul.f32 %v885_v25, %v870_v4 }
0x15dd   :  { %v889_v6 = vsel %vm888_vm2, %v887_v28, 0.0 }
0x15de   :  { %v890_v29 = vrot.slane %v889_v6, 4  ;;  %v926_v48 = vpop.permute.xlu0 %925 }
0x15e0   :  { %v891_v30 = vadd.f32 %v890_v29, %v889_v6 }
0x15e2   :  { %v892_v9 = vrot.slane %v891_v30, 2 }
0x15e4   :  { %v893_v31 = vadd.f32 %v892_v9, %v891_v30  ;;  %v1053_v9 = vrot.slane %v1486_v19, %v55_v12 }
0x15e6   :  { %v894_v32 = vrot.slane %v893_v31, 1 }
0x15e8   :  { %v895_v33 = vadd.f32 %v894_v32, %v893_v31 }
0x15ea   :  { %v897_v34 = vmul.f32 0.125, %v895_v33 }
0x15ec   :  { %v898_v35 = vsub.f32 %v887_v28, %v897_v34  ;;  %v1046_v28 = vrot.slane %v1474_v13, %v1045_v24 }
0x15ee   :  { %v899_v36 = vmul.f32 %v898_v35, %v898_v35 }
0x15f0   :  { %v900_v37 = vsel %vm888_vm2, %v899_v36, 0.0 }
0x15f1   :  { %v901_v38 = vrot.slane %v900_v37, 4 }
0x15f3   :  { %v902_v39 = vadd.f32 %v901_v38, %v900_v37 }
0x15f5   :  { %v903_v40 = vrot.slane %v902_v39, 2 }
0x15f7   :  { %v904_v41 = vadd.f32 %v903_v40, %v902_v39 }
0x15f9   :  { %v905_v0 = vrot.slane %v904_v41, 1 }
0x15fb   :  { %v906_v42 = vadd.f32 %v905_v0, %v904_v41 }
0x15fd   :  { %v907_v43 = vmul.f32 0.125, %v906_v42 }
0x15ff   :  { %v908_v44 = vadd.f32 1e-05, %v907_v43 }
0x1601   :  { %1327 = vrsqrt.f32 %v908_v44 }
0x160b   :  { %v1328_v45 = vpop.eup %1327 }
0x160c   :  { %v910_v47 = vmul.f32 %v1328_v45, %v898_v35 }
0x160e   :  { %v919_v49 = vmul.f32 %v917_v46, %v910_v47 }
0x1610   :  { %v928_v1 = vadd.f32 %v926_v48, %v919_v49 }
0x1612   :  { %v930_v50 = vmul.f32 0.01, %v928_v1  ;;  %vm929_vm3 = vcmp.ge.f32.partialorder %v928_v1, 0.0 }
0x1614   :  { %v931_v51 = vsel %vm929_vm3, %v928_v1, %v930_v50 }
0x1615   :  { %937 = vrot.lane.b32.xlu1 %v931_v51, %s1388_s6 }
0x1687   :  { %v938_v52 = vpop.permute.xlu1 %937 }
0x1688   :  { %1213 = vmatmul.mubr.msk.f32.vlgmr.msra.gmra.mrb[8].mxu0 %vm63_vm1, %v938_v52 }
0x175b   :  { %v1007_v55 = vpop.f32.mrb[8].mxu0 }
0x175c   :  { %v1008_v56 = vadd.f32 %v1007_v55, %v935_v54  ;;  %v1214_v57 = vpop.f32.mrb[9].mxu0 }
0x175e   :  { %v1011_v58 = vrot.slane %v1008_v56, 4 }
0x1760   :  { %v1012_v59 = vadd.f32 %v1011_v58, %v1008_v56 }
0x1762   :  { %v1013_v60 = vrot.slane %v1012_v59, 2 }
0x1764   :  { %v1014_v61 = vadd.f32 %v1013_v60, %v1012_v59 }
0x1766   :  { %v1015_v62 = vrot.slane %v1014_v61, 1 }
0x1768   :  { %v1016_v63 = vadd.f32 %v1015_v62, %v1014_v61 }
0x176a   :  { %v1017_v2 = vmul.f32 0.125, %v1016_v63 }
0x176c   :  { %v1018_v3 = vsub.f32 %v1008_v56, %v1017_v2 }
0x176e   :  { %v1019_v8 = vmul.f32 %v1018_v3, %v1018_v3 }
0x1770   :  { %v1020_v4 = vrot.slane %v1019_v8, 4 }
0x1772   :  { %v1021_v5 = vadd.f32 %v1020_v4, %v1019_v8 }
0x1774   :  { %v1022_v7 = vrot.slane %v1021_v5, 2 }
0x1776   :  { %v1023_v14 = vadd.f32 %v1022_v7, %v1021_v5 }
0x1778   :  { %v1024_v18 = vrot.slane %v1023_v14, 1 }
0x177a   :  { %v1025_v10 = vadd.f32 %v1024_v18, %v1023_v14 }
0x177c   :  { %v1026_v15 = vmul.f32 0.125, %v1025_v10 }
0x177e   :  { %v1027_v21 = vadd.f32 1e-05, %v1026_v15 }
0x1780   :  { %1329 = vrsqrt.f32 %v1027_v21 }
0x178a   :  { %v1330_v20 = vpop.eup %1329 }
0x178b   :  { %v1029_v22 = vmul.f32 %v1330_v20, %v1018_v3 }
0x178d   :  { %v1034_v26 = vmul.f32 %v1033_v17, %v1029_v22 }
0x178f   :  { %v1039_v25 = vadd.f32 %v1038_v23, %v1034_v26 }
0x1791   :  { %vm1040_vm4 = vcmp.ge.f32.partialorder %v1039_v25, 0.0  ;;  %v1041_v6 = vmul.f32 0.01, %v1039_v25 }
0x1793   :  { %v1042_v29 = vsel %vm1040_vm4, %v1039_v25, %v1041_v6 }
0x1794   :  { %v1047_v30 = vmul.f32 %v1046_v28, %v1042_v29 }
0x1796   :  { %1048 = vadd.xlane.f32.xlu0 %v1047_v30 }
0x1823   :  { %v1049_v31 = vpop.xlane.xlu0 %1048 }
0x1824   :  { %v1054_v32 = vadd.f32 %v1053_v9, %v1049_v31 }
0x1826   :  { %1056 = vst.msk [vmem:[%s1636_s2] sm:$0xff] %vm1055_vm5, %v1054_v32 }
0x1827   :  { %1061 = vsyncpa [#allocation3], 1 }
0x1828   :  { %1062 = vsyncpa [#allocation5], 1 }

</bundles_post_ra>
